<compile_context>
chip_gen: v5e
topology: v5e:2x2
jax: 0.10.0
libtpu: 0.0.40
codegen_flags: <defaults>
</compile_context>

<pallas_src>
import functools

import jax
import jax.numpy as jnp
from jax import lax
from jax.experimental import pallas as pl
from jax.experimental.pallas import tpu as pltpu

_BN_EPS = 1e-5


# ----------------------------- Pallas kernel -------------------------------

def _basic_block_kernel(x_ref, w1_ref, w2_ref, s1_ref, b1_ref, s2_ref, b2_ref,
                        o_ref, xp_ref, h1p_ref, *, H, W, Cin, Cout):
    """One batch element per grid step.

    x_ref   : (1, H, W*Cin)          f32, lane-dense input tile
    w*_ref  : (3, (W+2)*Cin, W*Cout) bf16 block-Toeplitz conv weights (per dy)
    s*/b*   : (1, W*Cout)            f32 folded BN scale/bias (tiled over W)
    o_ref   : (1, H, W*Cout)         f32 lane-dense output tile
    xp_ref  : (H+2, (W+2)*Cin)       bf16 zero-padded input scratch
    h1p_ref : (H+2, (W+2)*Cout)      bf16 zero-padded intermediate scratch
    """
    cdt = xp_ref.dtype
    WCi, WCo = W * Cin, W * Cout

    xv = x_ref[0]                                           # (H, W*Cin) f32

    # ---- zero-pad the input tile in VMEM (re-zeroed every grid step so the
    # ---- batch axis can be core-"parallel") --------------------------------
    xp_ref[...] = jnp.zeros_like(xp_ref)
    xp_ref[1:H + 1, Cin:Cin + WCi] = xv.astype(cdt)

    # ---- conv1 -> bn1 -> relu : 3 lane-dense matmuls, f32 accumulation -----
    acc1 = jnp.zeros((H, WCo), jnp.float32)
    for dy in range(3):
        acc1 += jnp.dot(xp_ref[dy:dy + H, :], w1_ref[dy],
                        preferred_element_type=jnp.float32)
    h1 = jnp.maximum(acc1 * s1_ref[...] + b1_ref[...], 0.0)  # (H, W*Cout)

    # ---- keep h1 zero-padded in VMEM: no HBM round trip between the convs --
    h1p_ref[...] = jnp.zeros_like(h1p_ref)
    h1p_ref[1:H + 1, Cout:Cout + WCo] = h1.astype(cdt)

    # ---- conv2 -> bn2 -> +identity -> relu ----------------------------------
    acc2 = jnp.zeros((H, WCo), jnp.float32)
    for dy in range(3):
        acc2 += jnp.dot(h1p_ref[dy:dy + H, :], w2_ref[dy],
                        preferred_element_type=jnp.float32)
    out = acc2 * s2_ref[...] + b2_ref[...] + xv              # residual in f32
    o_ref[0] = jnp.maximum(out, 0.0).astype(o_ref.dtype)


# ------------------------------ JAX wrapper ---------------------------------

def _fold_bn(gamma, beta, mean, var):
    scale = gamma / jnp.sqrt(var + _BN_EPS)
    bias = beta - mean * scale
    return scale.astype(jnp.float32), bias.astype(jnp.float32)


def _band_weights(w_oihw, W, compute_dtype):
    """PyTorch (Cout, Cin, 3, 3) -> block-Toeplitz (3, (W+2)*Cin, W*Cout).

    M[dy, wp*Cin + ci, w*Cout + co] = weight[co, ci, dy, wp - w] for wp-w in {0,1,2}.
    """
    Cout, Cin, _, _ = w_oihw.shape
    w_hwio = jnp.transpose(w_oihw, (2, 3, 1, 0)).astype(jnp.float32)  # (dy,dx,ci,co)
    M = jnp.zeros((3, W + 2, Cin, W, Cout), jnp.float32)
    for w in range(W):
        M = M.at[:, w:w + 3, :, w, :].set(w_hwio)
    return M.reshape(3, (W + 2) * Cin, W * Cout).astype(compute_dtype)


def basic_block_forward(x_nchw, params, *, compute_dtype=jnp.bfloat16):
    """BasicBlock forward (stride=1, no downsample, no dropout). NCHW in/out."""
    N, C, H, W = x_nchw.shape
    Cout = params["w1"].shape[0]
    assert C == Cout, "identity add requires inplanes == planes (no downsample)"

    # lane-dense NHWC: (N, H, W*C), kept f32 so the residual add is exact
    x = jnp.transpose(x_nchw, (0, 2, 3, 1)).reshape(N, H, W * C)
    x = x.astype(jnp.float32)

    s1, b1 = _fold_bn(params["bn1_gamma"], params["bn1_beta"],
                      params["bn1_mean"], params["bn1_var"])
    s2, b2 = _fold_bn(params["bn2_gamma"], params["bn2_beta"],
                      params["bn2_mean"], params["bn2_var"])
    # tile per-channel BN params to the (W*Cout,) lane layout
    s1t = jnp.tile(s1, W).reshape(1, W * Cout)
    b1t = jnp.tile(b1, W).reshape(1, W * Cout)
    s2t = jnp.tile(s2, W).reshape(1, W * Cout)
    b2t = jnp.tile(b2, W).reshape(1, W * Cout)

    w1 = _band_weights(params["w1"], W, compute_dtype)   # (3, (W+2)*C,   W*Cout)
    w2 = _band_weights(params["w2"], W, compute_dtype)   # (3, (W+2)*Cout, W*Cout)

    kernel = functools.partial(_basic_block_kernel, H=H, W=W, Cin=C, Cout=Cout)

    out_flat = pl.pallas_call(
        kernel,
        out_shape=jax.ShapeDtypeStruct((N, H, W * Cout), jnp.float32),
        grid=(N,),
        in_specs=[
            pl.BlockSpec((1, H, W * C), lambda n: (n, 0, 0)),                   # x
            pl.BlockSpec((3, (W + 2) * C, W * Cout), lambda n: (0, 0, 0)),      # w1
            pl.BlockSpec((3, (W + 2) * Cout, W * Cout), lambda n: (0, 0, 0)),   # w2
            pl.BlockSpec((1, W * Cout), lambda n: (0, 0)),                      # s1
            pl.BlockSpec((1, W * Cout), lambda n: (0, 0)),                      # b1
            pl.BlockSpec((1, W * Cout), lambda n: (0, 0)),                      # s2
            pl.BlockSpec((1, W * Cout), lambda n: (0, 0)),                      # b2
        ],
        out_specs=pl.BlockSpec((1, H, W * Cout), lambda n: (n, 0, 0)),
        scratch_shapes=[
            pltpu.VMEM((H + 2, (W + 2) * C), compute_dtype),      # padded x
            pltpu.VMEM((H + 2, (W + 2) * Cout), compute_dtype),   # padded h1
        ],
        compiler_params=pltpu.CompilerParams(
            dimension_semantics=("parallel",)),
    )(x, w1, w2, s1t, b1t, s2t, b2t)

    out_nhwc = out_flat.reshape(N, H, W, Cout)
    return jnp.transpose(out_nhwc, (0, 3, 1, 2))                      # NCHW


# --------------------------- pure-JAX reference -----------------------------

def reference_forward(x_nchw, params):
    def bn(y, g, b, m, v):
        g = g.reshape(1, -1, 1, 1); b = b.reshape(1, -1, 1, 1)
        m = m.reshape(1, -1, 1, 1); v = v.reshape(1, -1, 1, 1)
        return (y - m) / jnp.sqrt(v + _BN_EPS) * g + b

    def conv(y, w):
        return lax.conv_general_dilated(
            y, w, window_strides=(1, 1), padding=((1, 1), (1, 1)),
            dimension_numbers=("NCHW", "OIHW", "NCHW"))

    out = conv(x_nchw, params["w1"])
    out = jax.nn.relu(bn(out, params["bn1_gamma"], params["bn1_beta"],
                         params["bn1_mean"], params["bn1_var"]))
    out = conv(out, params["w2"])
    out = bn(out, params["bn2_gamma"], params["bn2_beta"],
             params["bn2_mean"], params["bn2_var"])
    return jax.nn.relu(out + x_nchw)


# ---------------------------------- main ------------------------------------

def make_params(key, inplanes, planes):
    ks = jax.random.split(key, 6)
    return {
        "w1": 0.1 * jax.random.normal(ks[0], (planes, inplanes, 3, 3), jnp.float32),
        "w2": 0.1 * jax.random.normal(ks[1], (planes, planes, 3, 3), jnp.float32),
        "bn1_gamma": 1.0 + 0.1 * jax.random.normal(ks[2], (planes,), jnp.float32),
        "bn1_beta": 0.1 * jax.random.normal(ks[3], (planes,), jnp.float32),
        "bn1_mean": jnp.zeros((planes,), jnp.float32),
        "bn1_var": jnp.ones((planes,), jnp.float32),
        "bn2_gamma": 1.0 + 0.1 * jax.random.normal(ks[4], (planes,), jnp.float32),
        "bn2_beta": 0.1 * jax.random.normal(ks[5], (planes,), jnp.float32),
        "bn2_mean": jnp.zeros((planes,), jnp.float32),
        "bn2_var": jnp.ones((planes,), jnp.float32),
    }


if __name__ == "__main__":
    N, C, H, W = 2, 8, 16, 16           # inplanes = planes = 8, stride = 1
    key = jax.random.PRNGKey(0)
    kx, kp = jax.random.split(key)
    x = jax.random.normal(kx, (N, C, H, W), jnp.float32)
    params = make_params(kp, C, C)

    out = jax.block_until_ready(basic_block_forward(x, params))
    ref = jax.block_until_ready(reference_forward(x, params))

    assert out.shape == (N, C, H, W)
    err = float(jnp.max(jnp.abs(out - ref)))
    # bf16 matmul operands with f32 accumulation and f32 residual/epilogue.
    assert jnp.allclose(out, ref, atol=5e-2, rtol=5e-2), f"max abs err {err}"
    print("KERNEL_OK")
</pallas_src>

<mosaic_0001>
module attributes {stable_mosaic.version = 11 : i64} {
  func.func @_basic_block_kernel(%arg0: i32, %arg1: memref<1x16x128xf32, #tpu.memory_space<vmem>>, %arg2: memref<3x144x128xbf16, #tpu.memory_space<vmem>>, %arg3: memref<3x144x128xbf16, #tpu.memory_space<vmem>>, %arg4: memref<1x128xf32, #tpu.memory_space<vmem>>, %arg5: memref<1x128xf32, #tpu.memory_space<vmem>>, %arg6: memref<1x128xf32, #tpu.memory_space<vmem>>, %arg7: memref<1x128xf32, #tpu.memory_space<vmem>>, %arg8: memref<1x16x128xf32, #tpu.memory_space<vmem>>, %arg9: memref<18x144xbf16, #tpu.memory_space<vmem>>, %arg10: memref<18x144xbf16, #tpu.memory_space<vmem>>) attributes {dimension_semantics = [#tpu.dimension_semantics<parallel>], iteration_bounds = array<i64: 2>, scalar_prefetch = 0 : i64, scratch_operands = 2 : i64, tpu.core_type = #tpu.core_type<tc>, window_params = [{transform_indices = @transform_0, window_bounds = array<i64: 1, 16, 128>}, {pipeline_mode = #tpu.pipeline_mode<synchronous>, transform_indices = @transform_1, window_bounds = array<i64: 3, 144, 128>}, {pipeline_mode = #tpu.pipeline_mode<synchronous>, transform_indices = @transform_2, window_bounds = array<i64: 3, 144, 128>}, {pipeline_mode = #tpu.pipeline_mode<synchronous>, transform_indices = @transform_3, window_bounds = array<i64: 1, 128>}, {pipeline_mode = #tpu.pipeline_mode<synchronous>, transform_indices = @transform_4, window_bounds = array<i64: 1, 128>}, {pipeline_mode = #tpu.pipeline_mode<synchronous>, transform_indices = @transform_5, window_bounds = array<i64: 1, 128>}, {pipeline_mode = #tpu.pipeline_mode<synchronous>, transform_indices = @transform_6, window_bounds = array<i64: 1, 128>}, {transform_indices = @transform_7, window_bounds = array<i64: 1, 16, 128>}]} {
    %c0 = arith.constant 0 : index
    %c0_0 = arith.constant 0 : index
    %c0_1 = arith.constant 0 : index
    %0 = vector.load %arg1[%c0, %c0_0, %c0_1] : memref<1x16x128xf32, #tpu.memory_space<vmem>>, vector<1x16x128xf32>
    %1 = vector.shape_cast %0 : vector<1x16x128xf32> to vector<16x128xf32>
    %cst = arith.constant 0.000000e+00 : bf16
    %2 = vector.broadcast %cst : bf16 to vector<18x144xbf16>
    %c0_2 = arith.constant 0 : index
    %c0_3 = arith.constant 0 : index
    %3 = vector.load %arg9[%c0_2, %c0_3] : memref<18x144xbf16, #tpu.memory_space<vmem>>, vector<18x144xbf16>
    tpu.vector_store %arg9[%c0_2, %c0_3], %2 {strides = array<i32>} : memref<18x144xbf16, #tpu.memory_space<vmem>>, vector<18x144xbf16>,
    %4 = arith.truncf %1 : vector<16x128xf32> to vector<16x128xbf16>
    %c1 = arith.constant 1 : index
    %c8 = arith.constant 8 : index
    %5 = vector.load %arg9[%c1, %c8] : memref<18x144xbf16, #tpu.memory_space<vmem>>, vector<16x128xbf16>
    tpu.vector_store %arg9[%c1, %c8], %4 {strides = array<i32>} : memref<18x144xbf16, #tpu.memory_space<vmem>>, vector<16x128xbf16>,
    %cst_4 = arith.constant 0.000000e+00 : f32
    %6 = vector.broadcast %cst_4 : f32 to vector<16x128xf32>
    %c0_5 = arith.constant 0 : index
    %c0_6 = arith.constant 0 : index
    %7 = vector.load %arg9[%c0_5, %c0_6] : memref<18x144xbf16, #tpu.memory_space<vmem>>, vector<16x144xbf16>
    %c0_7 = arith.constant 0 : index
    %c0_8 = arith.constant 0 : index
    %c0_9 = arith.constant 0 : index
    %8 = vector.load %arg2[%c0_7, %c0_8, %c0_9] : memref<3x144x128xbf16, #tpu.memory_space<vmem>>, vector<1x144x128xbf16>
    %9 = vector.shape_cast %8 : vector<1x144x128xbf16> to vector<144x128xbf16>
    %cst_10 = arith.constant dense<0.000000e+00> : vector<16x128xf32>
    %10 = tpu.matmul %7, %9, %cst_10 {dimension_numbers = #tpu.dot_dimension_numbers<[1], [0], [0], [1], [0, 0, 1, 1], [], []>} : vector<16x144xbf16>, vector<144x128xbf16>, vector<16x128xf32> -> vector<16x128xf32>
    %11 = arith.addf %6, %10 : vector<16x128xf32>
    %c1_11 = arith.constant 1 : index
    %c0_12 = arith.constant 0 : index
    %12 = vector.load %arg9[%c1_11, %c0_12] : memref<18x144xbf16, #tpu.memory_space<vmem>>, vector<16x144xbf16>
    %c1_13 = arith.constant 1 : index
    %c0_14 = arith.constant 0 : index
    %c0_15 = arith.constant 0 : index
    %13 = vector.load %arg2[%c1_13, %c0_14, %c0_15] : memref<3x144x128xbf16, #tpu.memory_space<vmem>>, vector<1x144x128xbf16>
    %14 = vector.shape_cast %13 : vector<1x144x128xbf16> to vector<144x128xbf16>
    %cst_16 = arith.constant dense<0.000000e+00> : vector<16x128xf32>
    %15 = tpu.matmul %12, %14, %cst_16 {dimension_numbers = #tpu.dot_dimension_numbers<[1], [0], [0], [1], [0, 0, 1, 1], [], []>} : vector<16x144xbf16>, vector<144x128xbf16>, vector<16x128xf32> -> vector<16x128xf32>
    %16 = arith.addf %11, %15 : vector<16x128xf32>
    %c2 = arith.constant 2 : index
    %c0_17 = arith.constant 0 : index
    %17 = vector.load %arg9[%c2, %c0_17] : memref<18x144xbf16, #tpu.memory_space<vmem>>, vector<16x144xbf16>
    %c2_18 = arith.constant 2 : index
    %c0_19 = arith.constant 0 : index
    %c0_20 = arith.constant 0 : index
    %18 = vector.load %arg2[%c2_18, %c0_19, %c0_20] : memref<3x144x128xbf16, #tpu.memory_space<vmem>>, vector<1x144x128xbf16>
    %19 = vector.shape_cast %18 : vector<1x144x128xbf16> to vector<144x128xbf16>
    %cst_21 = arith.constant dense<0.000000e+00> : vector<16x128xf32>
    %20 = tpu.matmul %17, %19, %cst_21 {dimension_numbers = #tpu.dot_dimension_numbers<[1], [0], [0], [1], [0, 0, 1, 1], [], []>} : vector<16x144xbf16>, vector<144x128xbf16>, vector<16x128xf32> -> vector<16x128xf32>
    %21 = arith.addf %16, %20 : vector<16x128xf32>
    %c0_22 = arith.constant 0 : index
    %c0_23 = arith.constant 0 : index
    %22 = vector.load %arg4[%c0_22, %c0_23] : memref<1x128xf32, #tpu.memory_space<vmem>>, vector<1x128xf32>
    %23 = vector.broadcast %22 : vector<1x128xf32> to vector<16x128xf32>
    %24 = arith.mulf %21, %23 : vector<16x128xf32>
    %c0_24 = arith.constant 0 : index
    %c0_25 = arith.constant 0 : index
    %25 = vector.load %arg5[%c0_24, %c0_25] : memref<1x128xf32, #tpu.memory_space<vmem>>, vector<1x128xf32>
    %26 = vector.broadcast %25 : vector<1x128xf32> to vector<16x128xf32>
    %27 = arith.addf %24, %26 : vector<16x128xf32>
    %cst_26 = arith.constant 0.000000e+00 : f32
    %28 = vector.broadcast %cst_26 : f32 to vector<16x128xf32>
    %29 = arith.maximumf %27, %28 : vector<16x128xf32>
    %cst_27 = arith.constant 0.000000e+00 : bf16
    %30 = vector.broadcast %cst_27 : bf16 to vector<18x144xbf16>
    %c0_28 = arith.constant 0 : index
    %c0_29 = arith.constant 0 : index
    %31 = vector.load %arg10[%c0_28, %c0_29] : memref<18x144xbf16, #tpu.memory_space<vmem>>, vector<18x144xbf16>
    tpu.vector_store %arg10[%c0_28, %c0_29], %30 {strides = array<i32>} : memref<18x144xbf16, #tpu.memory_space<vmem>>, vector<18x144xbf16>,
    %32 = arith.truncf %29 : vector<16x128xf32> to vector<16x128xbf16>
    %c1_30 = arith.constant 1 : index
    %c8_31 = arith.constant 8 : index
    %33 = vector.load %arg10[%c1_30, %c8_31] : memref<18x144xbf16, #tpu.memory_space<vmem>>, vector<16x128xbf16>
    tpu.vector_store %arg10[%c1_30, %c8_31], %32 {strides = array<i32>} : memref<18x144xbf16, #tpu.memory_space<vmem>>, vector<16x128xbf16>,
    %cst_32 = arith.constant 0.000000e+00 : f32
    %34 = vector.broadcast %cst_32 : f32 to vector<16x128xf32>
    %c0_33 = arith.constant 0 : index
    %c0_34 = arith.constant 0 : index
    %35 = vector.load %arg10[%c0_33, %c0_34] : memref<18x144xbf16, #tpu.memory_space<vmem>>, vector<16x144xbf16>
    %c0_35 = arith.constant 0 : index
    %c0_36 = arith.constant 0 : index
    %c0_37 = arith.constant 0 : index
    %36 = vector.load %arg3[%c0_35, %c0_36, %c0_37] : memref<3x144x128xbf16, #tpu.memory_space<vmem>>, vector<1x144x128xbf16>
    %37 = vector.shape_cast %36 : vector<1x144x128xbf16> to vector<144x128xbf16>
    %cst_38 = arith.constant dense<0.000000e+00> : vector<16x128xf32>
    %38 = tpu.matmul %35, %37, %cst_38 {dimension_numbers = #tpu.dot_dimension_numbers<[1], [0], [0], [1], [0, 0, 1, 1], [], []>} : vector<16x144xbf16>, vector<144x128xbf16>, vector<16x128xf32> -> vector<16x128xf32>
    %39 = arith.addf %34, %38 : vector<16x128xf32>
    %c1_39 = arith.constant 1 : index
    %c0_40 = arith.constant 0 : index
    %40 = vector.load %arg10[%c1_39, %c0_40] : memref<18x144xbf16, #tpu.memory_space<vmem>>, vector<16x144xbf16>
    %c1_41 = arith.constant 1 : index
    %c0_42 = arith.constant 0 : index
    %c0_43 = arith.constant 0 : index
    %41 = vector.load %arg3[%c1_41, %c0_42, %c0_43] : memref<3x144x128xbf16, #tpu.memory_space<vmem>>, vector<1x144x128xbf16>
    %42 = vector.shape_cast %41 : vector<1x144x128xbf16> to vector<144x128xbf16>
    %cst_44 = arith.constant dense<0.000000e+00> : vector<16x128xf32>
    %43 = tpu.matmul %40, %42, %cst_44 {dimension_numbers = #tpu.dot_dimension_numbers<[1], [0], [0], [1], [0, 0, 1, 1], [], []>} : vector<16x144xbf16>, vector<144x128xbf16>, vector<16x128xf32> -> vector<16x128xf32>
    %44 = arith.addf %39, %43 : vector<16x128xf32>
    %c2_45 = arith.constant 2 : index
    %c0_46 = arith.constant 0 : index
    %45 = vector.load %arg10[%c2_45, %c0_46] : memref<18x144xbf16, #tpu.memory_space<vmem>>, vector<16x144xbf16>
    %c2_47 = arith.constant 2 : index
    %c0_48 = arith.constant 0 : index
    %c0_49 = arith.constant 0 : index
    %46 = vector.load %arg3[%c2_47, %c0_48, %c0_49] : memref<3x144x128xbf16, #tpu.memory_space<vmem>>, vector<1x144x128xbf16>
    %47 = vector.shape_cast %46 : vector<1x144x128xbf16> to vector<144x128xbf16>
    %cst_50 = arith.constant dense<0.000000e+00> : vector<16x128xf32>
    %48 = tpu.matmul %45, %47, %cst_50 {dimension_numbers = #tpu.dot_dimension_numbers<[1], [0], [0], [1], [0, 0, 1, 1], [], []>} : vector<16x144xbf16>, vector<144x128xbf16>, vector<16x128xf32> -> vector<16x128xf32>
    %49 = arith.addf %44, %48 : vector<16x128xf32>
    %c0_51 = arith.constant 0 : index
    %c0_52 = arith.constant 0 : index
    %50 = vector.load %arg6[%c0_51, %c0_52] : memref<1x128xf32, #tpu.memory_space<vmem>>, vector<1x128xf32>
    %51 = vector.broadcast %50 : vector<1x128xf32> to vector<16x128xf32>
    %52 = arith.mulf %49, %51 : vector<16x128xf32>
    %c0_53 = arith.constant 0 : index
    %c0_54 = arith.constant 0 : index
    %53 = vector.load %arg7[%c0_53, %c0_54] : memref<1x128xf32, #tpu.memory_space<vmem>>, vector<1x128xf32>
    %54 = vector.broadcast %53 : vector<1x128xf32> to vector<16x128xf32>
    %55 = arith.addf %52, %54 : vector<16x128xf32>
    %56 = arith.addf %55, %1 : vector<16x128xf32>
    %cst_55 = arith.constant 0.000000e+00 : f32
    %57 = vector.broadcast %cst_55 : f32 to vector<16x128xf32>
    %58 = arith.maximumf %56, %57 : vector<16x128xf32>
    %c0_56 = arith.constant 0 : index
    %c0_57 = arith.constant 0 : index
    %c0_58 = arith.constant 0 : index
    %59 = vector.load %arg8[%c0_56, %c0_57, %c0_58] : memref<1x16x128xf32, #tpu.memory_space<vmem>>, vector<1x16x128xf32>
    %60 = vector.shape_cast %59 : vector<1x16x128xf32> to vector<16x128xf32>
    %61 = vector.shape_cast %58 : vector<16x128xf32> to vector<1x16x128xf32>
    tpu.vector_store %arg8[%c0_56, %c0_57, %c0_58], %61 {strides = array<i32>} : memref<1x16x128xf32, #tpu.memory_space<vmem>>, vector<1x16x128xf32>,
    return
  }
  func.func @transform_0(%arg0: i32) -> (i32, i32, i32) {
    %c0_i32 = arith.constant 0 : i32
    %c0_i32_0 = arith.constant 0 : i32
    %c0_i32_1 = arith.constant 0 : i32
    return %arg0, %c0_i32, %c0_i32_0 : i32, i32, i32
  }
  func.func @transform_1(%arg0: i32) -> (i32, i32, i32) {
    %c0_i32 = arith.constant 0 : i32
    %c0_i32_0 = arith.constant 0 : i32
    %c0_i32_1 = arith.constant 0 : i32
    %c0_i32_2 = arith.constant 0 : i32
    return %c0_i32, %c0_i32_0, %c0_i32_1 : i32, i32, i32
  }
  func.func @transform_2(%arg0: i32) -> (i32, i32, i32) {
    %c0_i32 = arith.constant 0 : i32
    %c0_i32_0 = arith.constant 0 : i32
    %c0_i32_1 = arith.constant 0 : i32
    %c0_i32_2 = arith.constant 0 : i32
    return %c0_i32, %c0_i32_0, %c0_i32_1 : i32, i32, i32
  }
  func.func @transform_3(%arg0: i32) -> (i32, i32) {
    %c0_i32 = arith.constant 0 : i32
    %c0_i32_0 = arith.constant 0 : i32
    %c0_i32_1 = arith.constant 0 : i32
    return %c0_i32, %c0_i32_0 : i32, i32
  }
  func.func @transform_4(%arg0: i32) -> (i32, i32) {
    %c0_i32 = arith.constant 0 : i32
    %c0_i32_0 = arith.constant 0 : i32
    %c0_i32_1 = arith.constant 0 : i32
    return %c0_i32, %c0_i32_0 : i32, i32
  }
  func.func @transform_5(%arg0: i32) -> (i32, i32) {
    %c0_i32 = arith.constant 0 : i32
    %c0_i32_0 = arith.constant 0 : i32
    %c0_i32_1 = arith.constant 0 : i32
    return %c0_i32, %c0_i32_0 : i32, i32
  }
  func.func @transform_6(%arg0: i32) -> (i32, i32) {
    %c0_i32 = arith.constant 0 : i32
    %c0_i32_0 = arith.constant 0 : i32
    %c0_i32_1 = arith.constant 0 : i32
    return %c0_i32, %c0_i32_0 : i32, i32
  }
  func.func @transform_7(%arg0: i32) -> (i32, i32, i32) {
    %c0_i32 = arith.constant 0 : i32
    %c0_i32_0 = arith.constant 0 : i32
    %c0_i32_1 = arith.constant 0 : i32
    return %arg0, %c0_i32, %c0_i32_0 : i32, i32, i32
  }
}

</mosaic_0001>

<bundles_post_ra>
// kernel: tpu_custom_call.1
= control target key start
LH: loop header
LB: loop body
LE: loop exit
PB: predicated region body
PF: predicated region fallthrough
CT: control target
= control target key end

     0   :  { %s2171_s0 = inlined_call_operand.hbm [shape: f32[2,16,128], index: 0, kind: input, shape index: {}]   ;;  %s2172_s1 = inlined_call_operand.hbm [shape: bf16[3,144,128], index: 1, kind: input, shape index: {}]   ;;  %s2173_s2 = inlined_call_operand.hbm [shape: bf16[3,144,128], index: 2, kind: input, shape index: {}]   ;;  %s2174_s3 = inlined_call_operand.vmem [shape: f32[1,128], index: 3, kind: input, shape index: {}]   ;;  %s2175_s4 = inlined_call_operand.vmem [shape: f32[1,128], index: 4, kind: input, shape index: {}]   ;;  %s2176_s5 = inlined_call_operand.vmem [shape: f32[1,128], index: 5, kind: input, shape index: {}]   ;;  %s2177_s6 = inlined_call_operand.vmem [shape: f32[1,128], index: 6, kind: input, shape index: {}]   ;;  %s2178_s7 = inlined_call_operand.hbm [shape: f32[2,16,128], index: 7, kind: output, shape index: {}]  }
   0x1   :  { %2179 = sst [smem:[#allocation14_spill]] %s2172_s1 }
   0x2   :  { %12 = vsyncpa [#allocation5], 0 }
   0x3   :  { %14 = vsyncpa [#allocation5 + $0x1], 0 }
   0x4   :  { %15 = vsyncpa [#allocation8], 0 }
   0x5   :  { %16 = vsyncpa [#allocation6], 0 }
   0x6   :  { %18 = vsyncpa [#allocation6 + $0x1], 0  ;;  %s1911_s24 = smov 0   ;;  %s1913_s25 = smov 0  }
   0x7   :  { %s1915_s26 = smov 0   ;;  %s1917_s27 = smov 0  }
   0x8 LB: > { %s1932_s28 = sadd.s32 4294967295, %s1860_s27   ;;  %s1326_s29 = sadd.s32 4294967294, %s1860_s27   ;;  %s1860_s27 = sphi %s1917_s27, %s2202_s27   ;;  %s1856_s26 = sphi %s1915_s26, %s2201_s26   ;;  %s1852_s25 = sphi %s1913_s25, %s2200_s25   ;;  %s1848_s24 = sphi %s1911_s24, %s2199_s24  }
   0x9   : > { %p44_p0 = scmp.ne.s32.totalorder %s1852_s25, %s1848_s24  ;;  %p45_p1 = scmp.eq.s32.totalorder %s1932_s28, 0 }
   0xa   : > { %p194_p2 = scmp.eq.s32.totalorder %s1932_s28, 1  ;;  %p200_p3 = scmp.eq.s32.totalorder %s1326_s29, 1 }
   0xb   : > { %p1941_p4 = por %p45_p1, %p44_p0  ;;  %p1327_p5 = scmp.ge.s32.totalorder %s1860_s27, 1 }
   0xc   : > { %p1946_p6 = por %p200_p3, %p44_p0  ;;  %p207_p7 = scmp.lt.s32.totalorder %s1860_s27, 3 }
   0xd   : > { %s2182_s1 = sld [smem:[#allocation14_spill]]  ;;  %s1862_s13 = smov [#allocation7]  }
   0xe   : > { %p1954_p8 = pnand %p1327_p5, %p207_p7  ;;  %s220_s14 = sshll.u32 %s1862_s13, 4  ;;  %s221_s14 = int_to_ptr.vmem [resolvable:$true] %s220_s14 }
   0xf   : > { %s232_s17 = sshll.u32 %s2173_s2, 4  ;;  %s1863_s18 = smov 64   ;;  %s233_s17 = int_to_ptr.hbm [resolvable:$true] %s232_s17 }
  0x10   : > { %p1634_p9 = pneg %p1954_p8  ;;  %s1864_s19 = smov 4  }
  0x11   : > { %s1865_s20 = smov [#allocation9]   ;;  %s1967_s22 = sadd.s32 1, %s1860_s27  }
  0x12   : > { %p1635_p10 = pnand %p1634_p9, %p45_p1  ;;  %s234_s21 = sshll.u32 %s1865_s20, 4  ;;  %s235_s21 = int_to_ptr.vmem [resolvable:$true] %s234_s21 }
  0x13   : > { %s218_s11 = sshll.u32 %s2182_s1, 4  ;;  %s31_s23 = sadd.s32 1, %s1856_s26  ;;  %s219_s11 = int_to_ptr.hbm [resolvable:$true] %s218_s11 }
  0x14   : > { %1637 = dma.hbm_to_vmem [thread:$0]  (!%p1635_p10), %s219_s11, 3456, %s221_s14, [#allocation8], %s1863_s18, %s1863_s18, %s1864_s19  }
  0x15   : > { %1640 = dma.hbm_to_vmem [thread:$0]  (!%p1635_p10), %s233_s17, 3456, %s235_s21, [#allocation8], %s1863_s18, %s1863_s18, %s1864_s19  }
  0x16   : > { %s28_s29 = ssub.s32 %s1860_s27, %s1967_s22  ;;  %p38_p12 = scmp.ne.s32.totalorder %s1856_s26, %s1852_s25 }
  0x17   : > { %p29_p13 = scmp.eq.s32.totalorder %s28_s29, 0  ;;  %p39_p0 = scmp.eq.s32.totalorder %s1860_s27, 0 }
  0x18   : > { %p1977_p3 = por %p194_p2, %p38_p12  ;;  %p1651_p5 = scmp.lt.s32.totalorder %s1860_s27, 2 }
  0x19   : > { %s1983_s10 = scalar_select %p29_p13, %s1856_s26, %s31_s23  }
  0x1a   : > { %p40_p7 = por %p39_p0, %p38_p12  ;;  %s260_s11 = sand.u32 1, %s1856_s26  }
  0x1b   : > { %s1331_s13 = sshll.u32 %s260_s11, 4  ;;  %s1566_s14 = sshll.u32 %s1860_s27, 4 }
  0x1c   : > { %s269_s17 = scalar_lea.hbm %s2171_s0, %s1566_s14  ;;  %s264_s18 = scalar_lea.vmem [#allocation4], %s1331_s13 }
  0x1d   : > { %s272_s19 = sshll.u32 %s264_s18, 4  ;;  %s270_s20 = sshll.u32 %s269_s17, 4  ;;  %s273_s19 = int_to_ptr.vmem [resolvable:$true] %s272_s19  ;;  %s271_s20 = int_to_ptr.hbm [resolvable:$true] %s270_s20 }
  0x1e   : > { %p1990_p2 = pnand %p1651_p5, %p40_p7  ;;  %s261_s23 = scalar_lea.sflag [#allocation5], %s260_s11 }
  0x1f   : > { %s1760_s29 = sshra.s32 %s271_s20, 4  ;;  %s1767_s15 = scalar_lea.hbm %s2171_s0, 32  ;;  %s1761_s29 = int_to_ptr.hbm [resolvable:$true] %s1760_s29 }
  0x20   : > { %s1762_s1 = scalar_lea.hbm %s1761_s29, 16  ;;  %p1764_p10 = pneg %p1990_p2 }
  0x21   : > { %p1763_p9 = scmp.ne.s32.totalorder %s1761_s29, %s1762_s1  ;;  %p1768_p0 = scmp.lt.s32.totalorder %s1761_s29, %s2171_s0 }
  0x22   : > { %p1769_p5 = scmp.lt.s32.totalorder %s1767_s15, %s1762_s1 }
  0x23   : > { %p1765_p12 = pnand %p1764_p10, %p1763_p9 }
  0x24   : > { %p1770_p7 = por %p1769_p5, %p1768_p0 }
  0x25   : > { %p1766_p13 = pneg %p1765_p12 }
  0x27   : > { %p1771_p11 = pnand %p1770_p7, %p1766_p13 }
  0x29   : > { %1774 = shalt.err (!%p1771_p11)
}
  0x2a   : > { %s1866_s11 = smov 128   ;;  %s1867_s18 = smov 8  }
  0x2b   : > { %1644 = dma.hbm_to_vmem [thread:$0]  (!%p1990_p2), %s271_s20, 256, %s273_s19, %s261_s23, %s1866_s11, %s1866_s11, %s1867_s18  }
  0x2c   : > { %284 = sbr.rel (%p1954_p8) target bundleno = 672 (0x2a0), region = 48  ;;  %s2007_s14 = sand.u32 (!%p1954_p8), 1, %s1852_s25  }
  0x2d   : > { %s1335_s29 = sshll.u32 (!%p1954_p8), %s2007_s14, 4  ;;  %s287_s1 = scalar_lea.sflag (!%p1954_p8), [#allocation5], %s2007_s14 }
  0x2e   : > { %s290_s13 = scalar_lea.vmem (!%p1954_p8), [#allocation4], %s1335_s29 }
  0x31   : > { %1835 = dma.done.wait (%p1941_p4), %s287_s1, 256  }
  0x32   : > { %1837 = vsyncadd (%p1941_p4), %s287_s1, 4294967040 }
  0x33   : > { %1839 = dma.done.wait (%p45_p1), [#allocation8], 6912  }
  0x34   : > { %1841 = vsyncadd (%p45_p1), [#allocation8], 4294960384  ;;  %vm335_vm0 = vcmask 1043456   ;;  %vm336_vm1 = vcmask 130052   ;;  %v1868_v0 = vmov 0   ;;  %v2021_v1 = vld [vmem:[%s290_s13] sm:$0xff] }
  0x35   : > { %vm337_vm2 = vmor %vm336_vm1, %vm335_vm0  ;;  %v2023_v2 = vld [vmem:[%s290_s13 + $0x8] sm:$0xff]  ;;  %v344_v4 = vpack.c.bf16 %v2021_v1, %v2021_v1  ;;  %v1573_v6 = vld [vmem:[#allocation7 + $0x30] sm:$0xff]  ;;  %vm346_vm3 = vsmask.f32 256  ;;  %vm347_vm4 = vsmask.f32 4368 }
  0x36   : > { %338 = vst.msk [vmem:[#allocation2] sm:$0xff] %vm337_vm2, %v1868_v0  ;;  %v1574_v3 = vld [vmem:[#allocation7 + $0x38] sm:$0xff]  ;;  %v345_v5 = vpack.c.bf16 %v2023_v2, %v2023_v2  ;;  %v1583_v7 = vld [vmem:[#allocation7 + $0x80] sm:$0xff]  ;;  %s1869_s30 = smov 8   ;;  %vm2032_vm5 = vmor %vm346_vm3, %vm347_vm4  ;;  %vm340_vm6 = vcmask 1040384   ;;  %vm341_vm7 = vcmask 126980  }
  0x37   : > { %339 = vst.msk [vmem:[#allocation2 + $0x8] sm:$0xff] %vm337_vm2, %v1868_v0  ;;  %627 = vmatpush.bf16.msra.mxu2 %v1574_v3  ;;  %v350_v8 = vshrl.u32 %v344_v4, 16  ;;  %v353_v9 = vshll.u32 %v344_v4, 16  ;;  %542 = vmatpush.bf16.msra.mxu0 %v1583_v7  ;;  %v1572_v20 = vld [vmem:[#allocation7 + $0x28] sm:$0xff]  ;;  %v1582_v21 = vld [vmem:[#allocation7 + $0x78] sm:$0xff]  ;;  %vm342_vm8 = vmor %vm341_vm7, %vm340_vm6  ;;  %vm396_vm9 = vcmask 1040448  }
  0x38   : > { %789 = vst.msk [vmem:[#allocation3] sm:$0xff] %vm337_vm2, %v1868_v0  ;;  %v358_v10 = vshrl.u32 %v345_v5, 16  ;;  %v361_v13 = vshll.u32 %v345_v5, 16  ;;  %v1571_v22 = vld [vmem:[#allocation7 + $0x20] sm:$0xff]  ;;  %v1581_v23 = vld [vmem:[#allocation7 + $0x70] sm:$0xff]  ;;  %v1570_v24 = vld [vmem:[#allocation7 + $0x18] sm:$0xff] }
  0x39   : > { %790 = vst.msk [vmem:[#allocation3 + $0x8] sm:$0xff] %vm337_vm2, %v1868_v0  ;;  %v352_v11 = vrot.slane %v350_v8, 7  ;;  %v1580_v25 = vld [vmem:[#allocation7 + $0x68] sm:$0xff]  ;;  %v1569_v26 = vld [vmem:[#allocation7 + $0x10] sm:$0xff]  ;;  %v1579_v28 = vld [vmem:[#allocation7 + $0x60] sm:$0xff]  ;;  %vm382_vm10 = vcmask 1043520  }
  0x3a   : > { %v360_v12 = vrot.slane %v358_v10, 7  ;;  %343 = vst.msk [vmem:[#allocation2 + $0x10] sm:$0x11] %vm342_vm8, %v1868_v0  ;;  %v1584_v27 = vld [vmem:[#allocation7 + $0x88] sm:$0xff]  ;;  %v1575_v31 = vld [vmem:[#allocation7 + $0x40] sm:$0xff]  ;;  %v1578_v33 = vld [vmem:[#allocation7 + $0x58] sm:$0xff] }
  0x3b   : > { %628 = vmatpush.bf16.msra.mxu2 %v1573_v6  ;;  %v355_v14 = vor.u32 %v353_v9, %v352_v11  ;;  %v356_v16 = vrot.slane %v352_v11, 4  ;;  %543 = vmatpush.bf16.msra.mxu0 %v1582_v21  ;;  %791 = vst.msk [vmem:[#allocation3 + $0x10] sm:$0x11] %vm342_vm8, %v1868_v0  ;;  %v1592_v29 = vld [vmem:[#allocation7 + $0xc8] sm:$0xff]  ;;  %v1591_v32 = vld [vmem:[#allocation7 + $0xc0] sm:$0xff]  ;;  %v1577_v35 = vld [vmem:[#allocation7 + $0x50] sm:$0xff] }
  0x3c   : > { %v365_v15 = vrot.slane %v360_v12, 4  ;;  %v363_v17 = vor.u32 %v361_v13, %v360_v12  ;;  %v1568_v30 = vld [vmem:[#allocation7 + $0x8] sm:$0xff]  ;;  %563 = vmatpush.bf16.msra.mxu1 %v1584_v27  ;;  %648 = vmatpush.bf16.msra.mxu3 %v1575_v31  ;;  %v1567_v34 = vld [vmem:[#allocation7] sm:$0xff]  ;;  %v1590_v36 = vld [vmem:[#allocation7 + $0xb8] sm:$0xff]  ;;  %vm383_vm11 = vsmask.f32 7938 }
  0x3d   : > { %366 = vrot.lane.b32.xlu0 %v355_v14, %s1869_s30  ;;  %v1593_v37 = vld [vmem:[#allocation7 + $0xd0] sm:$0xff]  ;;  %v1576_v38 = vld [vmem:[#allocation7 + $0x48] sm:$0xff]  ;;  %vm385_vm12 = vcmask 64516   ;;  %vm386_vm13 = vsmask.f32 7954  ;;  %vm2040_vm14 = vmand %vm396_vm9, %vm346_vm3  ;;  %vm398_vm15 = vcmask 61444  }
  0x3e   : > { %370 = vrot.lane.b32.xlu1 %v365_v15, %s1869_s30  ;;  %v364_v19 = vsel %vm2032_vm5, %v356_v16, %v363_v17  ;;  %v1589_v39 = vld [vmem:[#allocation7 + $0xb0] sm:$0xff]  ;;  %vm399_vm0 = vsmask.f32 4352  ;;  %vm2045_vm1 = vmand %vm382_vm10, %vm383_vm11  ;;  %v1588_v44 = vld [vmem:[#allocation7 + $0xa8] sm:$0xff]  ;;  %vm375_vm3 = vcmask 64512   ;;  %vm538_vm9 = vcmask 130048  }
  0x3f   : > { %629 = vmatpush.bf16.msra.mxu2 %v1572_v20  ;;  %544 = vmatpush.bf16.msra.mxu0 %v1581_v23  ;;  %vm2050_vm2 = vmand %vm385_vm12, %vm386_vm13  ;;  %v1587_v47 = vld [vmem:[#allocation7 + $0xa0] sm:$0xff]  ;;  %v389_v48 = vld [vmem:[#allocation2] sm:$0xff]  ;;  %vm680_vm11 = vcmask 1046528   ;;  %s1621_s11 = sshll.u32 %s1932_s28, 4  ;;  %s331_s18 = scalar_lea.vmem [#allocation10], %s1335_s29 }
  0x40   : > { %745 = vmatpush.bf16.msrb.mxu1 %v1592_v29  ;;  %766 = vmatpush.bf16.msrb.mxu3 %v1593_v37  ;;  %vm2054_vm4 = vmand %vm398_vm15, %vm399_vm0  ;;  %v1586_v56 = vld [vmem:[#allocation7 + $0x98] sm:$0xff]  ;;  %v1585_v58 = vld [vmem:[#allocation7 + $0x90] sm:$0xff]  ;;  %s1230_s12 = scalar_lea.hbm %s2178_s7, %s1621_s11  ;;  %s1231_s19 = sshll.u32 %s331_s18, 4  ;;  %s1232_s19 = int_to_ptr.vmem [resolvable:$true] %s1231_s19 }
  0x41   : > { %vm388_vm6 = vmor %vm2050_vm2, %vm2045_vm1  ;;  %v402_v50 = vld [vmem:[#allocation2 + $0x10] sm:$0x11]  ;;  %v1608_v18 = vld [vmem:[#allocation9 + $0x70] sm:$0xff]  ;;  %s1233_s20 = sshll.u32 %s1230_s12, 4  ;;  %s1219_s28 = scalar_lea.sflag [#allocation6], %s2007_s14  ;;  %s1234_s20 = int_to_ptr.hbm [resolvable:$true] %s1233_s20 }
  0x42   : > { %vm401_vm7 = vmor %vm2054_vm4, %vm2040_vm14  ;;  %s1804_s21 = sshra.s32 %s1234_s20, 4  ;;  %s1810_s16 = scalar_lea.hbm %s2178_s7, 32  ;;  %s1805_s21 = int_to_ptr.hbm [resolvable:$true] %s1804_s21 }
  0x43   : > { %630 = vmatpush.bf16.msra.mxu2 %v1571_v22  ;;  %545 = vmatpush.bf16.msra.mxu0 %v1580_v25  ;;  %vm2080_vm8 = vmor %vm385_vm12, %vm382_vm10  ;;  %vm458_vm10 = vsmask.f32 7424  ;;  %s1806_s23 = scalar_lea.hbm %s1805_s21, 16  ;;  %p1811_p11 = scmp.lt.s32.totalorder %s1805_s21, %s2178_s7 }
  0x44   : > { %746 = vmatpush.bf16.msrb.mxu1 %v1591_v32  ;;  %p1807_p1 = scmp.ne.s32.totalorder %s1805_s21, %s1806_s23  ;;  %p1812_p2 = scmp.lt.s32.totalorder %s1810_s16, %s1806_s23 }
  0x45   : > { %368 = vrot.lane.b32.xlu0 %v364_v19, %s1869_s30 }
  0x46   : > { %p1808_p4 = pnand %p1807_p1, %p1977_p3  ;;  %p1813_p9 = por %p1812_p2, %p1811_p11 }
  0x47   : > { %631 = vmatpush.bf16.msra.mxu2 %v1570_v24  ;;  %546 = vmatpush.bf16.msra.mxu0 %v1579_v28 }
  0x48   : > { %747 = vmatpush.bf16.msrb.mxu1 %v1590_v36  ;;  %p1809_p8 = pneg %p1808_p4 }
  0x4a   : > { %p1814_p10 = pnand %p1813_p9, %p1809_p8 }
  0x4b   : > { %632 = vmatpush.bf16.msra.mxu2 %v1569_v26  ;;  %547 = vmatpush.bf16.msra.mxu0 %v1578_v33 }
  0x4c   : > { %748 = vmatpush.bf16.msrb.mxu1 %v1589_v39 }
  0x4f   : > { %633 = vmatpush.bf16.msra.mxu2 %v1568_v30  ;;  %548 = vmatpush.bf16.msra.mxu0 %v1577_v35 }
  0x50   : > { %749 = vmatpush.bf16.msrb.mxu1 %v1588_v44 }
  0x53   : > { %634 = vmatpush.bf16.msra.mxu2 %v1567_v34  ;;  %549 = vmatpush.bf16.msra.mxu0 %v1576_v38 }
  0x54   : > { %750 = vmatpush.bf16.msrb.mxu1 %v1587_v47 }
  0x58   : > { %751 = vmatpush.bf16.msrb.mxu1 %v1586_v56  ;;  %v1696_v56 = vld [vmem:[%s2174_s3] ss:$0 sm:$0xff] }
  0x5c   : > { %752 = vmatpush.bf16.msrb.mxu1 %v1585_v58  ;;  %v1697_v58 = vld [vmem:[%s2175_s4] ss:$0 sm:$0xff] }
  0xaf   : > { %v367_v45 = vpop.permute.xlu0 %366 }
  0xb0   : > { %v371_v46 = vpop.permute.xlu1 %370  ;;  %v372_v49 = vrot.slane %v367_v45, 4 }
  0xb1   : > { %v374_v51 = vrot.slane %v371_v46, 4 }
  0xb2   : > { %v376_v52 = vsel %vm375_vm3, %v372_v49, %v367_v45 }
  0xb3   : > { %v378_v53 = vsel %vm375_vm3, %v374_v51, %v371_v46  ;;  %v390_v54 = vsel %vm388_vm6, %v376_v52, %v389_v48 }
  0xb4   : > { %v403_v55 = vsel %vm401_vm7, %v378_v53, %v402_v50  ;;  %391 = vst [vmem:[#allocation2] sm:$0xff] %v390_v54  ;;  %v448_v4 = vunpack.c.l.b16 %v390_v54  ;;  %v449_v5 = vunpack.c.h.b16 %v390_v54 }
  0xb5   : > { %404 = vst [vmem:[#allocation2 + $0x10] sm:$0x11] %v403_v55 }
  0xb7   : > { %v369_v57 = vpop.permute.xlu0 %368 }
  0xb8   : > { %v373_v60 = vrot.slane %v369_v57, 4 }
  0xba   : > { %v377_v61 = vsel %vm375_vm3, %v373_v60, %v369_v57 }
  0xbb   : > { %395 = vst.msk [vmem:[#allocation2 + $0x8] sm:$0xff] %vm2080_vm8, %v377_v61  ;;  %v655_v16 = vld [vmem:[#allocation2] sm:$0xee] }
  0xbc   : > { %v425_v62 = vld [vmem:[#allocation2 + $0x10] sm:$0x11]  ;;  %v677_v26 = vunpack.c.h.b16 %v655_v16  ;;  %v676_v32 = vunpack.c.l.b16 %v655_v16 }
  0xbd   : > { %v452_v63 = vunpack.c.l.b16 %v425_v62  ;;  %v453_v0 = vunpack.c.h.b16 %v425_v62 }
  0xbf   : > { %v456_v8 = vpack.c.b16 %v452_v63, %v452_v63  ;;  %v457_v9 = vpack.c.b16 %v453_v0, %v453_v0 }
  0xc1   : > { %v467_v14 = vshll.u32 %v456_v8, 16  ;;  %v479_v15 = vshll.u32 %v457_v9, 16  ;;  %v685_v31 = vrot.slane %v457_v9, 1  ;;  %v682_v36 = vrot.slane %v456_v8, 1 }
  0xc2   : > { %v406_v3 = vld [vmem:[#allocation2 + $0x8] sm:$0xff] }
  0xc3   : > { %v450_v6 = vunpack.c.l.b16 %v406_v3  ;;  %v451_v7 = vunpack.c.h.b16 %v406_v3  ;;  %v469_v23 = vrot.slane %v467_v14, 1  ;;  %v481_v25 = vrot.slane %v479_v15, 1 }
  0xc5   : > { %v454_v10 = vpack.c.b16 %v450_v6, %v448_v4  ;;  %v455_v11 = vpack.c.b16 %v451_v7, %v449_v5  ;;  %v679_v29 = vpack.c.b16 %v451_v7, %v677_v26  ;;  %v678_v33 = vpack.c.b16 %v450_v6, %v676_v32  ;;  %v1600_v26 = vld [vmem:[#allocation9 + $0x30] sm:$0xff]  ;;  %v1618_v32 = vld [vmem:[#allocation9 + $0xc0] sm:$0xff] }
  0xc7   : > { %635 = vmatmul.bf16.vlgmr.msra.gmra.mxu2 %v454_v10  ;;  %v474_v12 = vshll.u32 %v455_v11, 16  ;;  %1412 = vmatmul.msk.bf16.vlgmr.msra.gmra.mxu3 %vm538_vm9, %v455_v11  ;;  %v462_v13 = vshll.u32 %v454_v10, 16  ;;  %v460_v17 = vshrl.u32 %v454_v10, 16  ;;  %v472_v20 = vshrl.u32 %v455_v11, 16 }
  0xc8   : > { %v684_v30 = vrot.slane %v679_v29, 1  ;;  %v681_v35 = vrot.slane %v678_v33, 1  ;;  %v1619_v29 = vld [vmem:[#allocation9 + $0xc8] sm:$0xff]  ;;  %v1597_v33 = vld [vmem:[#allocation9 + $0x18] sm:$0xff] }
  0xc9   : > { %v464_v19 = vrot.slane %v462_v13, 1  ;;  %v476_v21 = vrot.slane %v474_v12, 1  ;;  %1170 = vmatpush.bf16.msrb.mxu0 %v1619_v29 }
  0xca   : > { %v686_v34 = vsel %vm680_vm11, %v684_v30, %v685_v31  ;;  %v683_v37 = vsel %vm680_vm11, %v681_v35, %v682_v36  ;;  %v1609_v30 = vld [vmem:[#allocation9 + $0x78] sm:$0xff]  ;;  %v1598_v31 = vld [vmem:[#allocation9 + $0x20] sm:$0xff]  ;;  %v1607_v35 = vld [vmem:[#allocation9 + $0x68] sm:$0xff] }
  0xcb   : > { %v465_v22 = vor.u32 %v464_v19, %v460_v17  ;;  %v477_v24 = vor.u32 %v476_v21, %v472_v20  ;;  %v1596_v36 = vld [vmem:[#allocation9 + $0x10] sm:$0xff] }
  0xcd   : > { %v470_v27 = vsel %vm458_vm10, %v465_v22, %v469_v23  ;;  %v482_v28 = vsel %vm458_vm10, %v477_v24, %v481_v25  ;;  %v1601_v25 = vld [vmem:[#allocation9 + $0x38] sm:$0xff]  ;;  %1171 = vmatpush.bf16.msrb.mxu0 %v1618_v32 }
  0xce   : > { %550 = vmatmul.bf16.vlgmr.msra.gmra.mxu0 %v470_v27  ;;  %1375 = vmatmul.msk.bf16.vlgmr.msra.gmra.mxu1 %vm538_vm9, %v482_v28  ;;  %v1610_v27 = vld [vmem:[#allocation9 + $0x80] sm:$0xff]  ;;  %v1599_v28 = vld [vmem:[#allocation9 + $0x28] sm:$0xff] }
  0xcf   : > { %1053 = vmatpush.bf16.msrb.mxu2 %v1601_v25  ;;  %968 = vmatpush.bf16.msra.mxu3 %v1610_v27 }
  0xd3   : > { %1054 = vmatpush.bf16.msrb.mxu2 %v1600_v26  ;;  %969 = vmatpush.bf16.msra.mxu3 %v1609_v30 }
  0xd7   : > { %1449 = vmatmul.msk.bf16.vlgmr.msrb.gmra.mxu3 %vm538_vm9, %v686_v34  ;;  %1055 = vmatpush.bf16.msrb.mxu2 %v1599_v28  ;;  %v1617_v34 = vld [vmem:[#allocation9 + $0xb8] sm:$0xff] }
  0xd8   : > { %970 = vmatpush.bf16.msra.mxu3 %v1608_v18  ;;  %1172 = vmatpush.bf16.msrb.mxu0 %v1617_v34 }
  0xdb   : > { %1056 = vmatpush.bf16.msrb.mxu2 %v1598_v31 }
  0xdc   : > { %971 = vmatpush.bf16.msra.mxu3 %v1607_v35 }
  0xde   : > { %753 = vmatmul.bf16.vlgmr.msrb.gmra.mxu1 %v683_v37  ;;  %v1616_v37 = vld [vmem:[#allocation9 + $0xb0] sm:$0xff] }
  0xdf   : > { %1057 = vmatpush.bf16.msrb.mxu2 %v1597_v33  ;;  %1173 = vmatpush.bf16.msrb.mxu0 %v1616_v37 }
  0xe3   : > { %1058 = vmatpush.bf16.msrb.mxu2 %v1596_v36 }
 0x14a   : > { %v650_v38 = vpop.f32.mrf.mxu3  ;;  %v636_v48 = vpop.f32.mrf.mxu2 }
 0x14b   : > { %v565_v39 = vpop.f32.mrf.mxu1  ;;  %v551_v44 = vpop.f32.mrf.mxu0 }
 0x14c   : > { %v566_v47 = vadd.f32 %v565_v39, %v551_v44  ;;  %v1595_v39 = vld [vmem:[#allocation9 + $0x8] sm:$0xff] }
 0x14d   : > { %1059 = vmatpush.bf16.msrb.mxu2 %v1595_v39  ;;  %v1615_v44 = vld [vmem:[#allocation9 + $0xa8] sm:$0xff] }
 0x14e   : > { %v637_v49 = vadd.f32 %v636_v48, %v566_v47  ;;  %1174 = vmatpush.bf16.msrb.mxu0 %v1615_v44  ;;  %v1614_v47 = vld [vmem:[#allocation9 + $0xa0] sm:$0xff] }
 0x14f   : > { %v1602_v48 = vld [vmem:[#allocation9 + $0x40] sm:$0xff] }
 0x150   : > { %v651_v54 = vadd.f32 %v650_v38, %v637_v49  ;;  %v1606_v38 = vld [vmem:[#allocation9 + $0x60] sm:$0xff]  ;;  %v1604_v49 = vld [vmem:[#allocation9 + $0x50] sm:$0xff]  ;;  %1074 = vmatpush.bf16.msra.mxu1 %v1602_v48 }
 0x151   : > { %972 = vmatpush.bf16.msra.mxu3 %v1606_v38 }
 0x152   : > { %v652_v45 = vpop.f32.mrf.mxu3  ;;  %v638_v60 = vpop.f32.mrf.mxu2  ;;  %1175 = vmatpush.bf16.msrb.mxu0 %v1614_v47 }
 0x153   : > { %v567_v46 = vpop.f32.mrf.mxu1  ;;  %v553_v50 = vpop.f32.mrf.mxu0 }
 0x154   : > { %v568_v53 = vadd.f32 %v567_v46, %v553_v50  ;;  %v1594_v46 = vld [vmem:[#allocation9] sm:$0xff]  ;;  %v1613_v50 = vld [vmem:[#allocation9 + $0x98] sm:$0xff] }
 0x155   : > { %1060 = vmatpush.bf16.msrb.mxu2 %v1594_v46 }
 0x156   : > { %v639_v61 = vadd.f32 %v638_v60, %v568_v53  ;;  %1176 = vmatpush.bf16.msrb.mxu0 %v1613_v50  ;;  %v830_v60 = vld [vmem:[#allocation3 + $0x10] sm:$0x11] }
 0x158   : > { %v653_v5 = vadd.f32 %v652_v45, %v639_v61  ;;  %v1605_v45 = vld [vmem:[#allocation9 + $0x58] sm:$0xff] }
 0x159   : > { %973 = vmatpush.bf16.msra.mxu3 %v1605_v45 }
 0x15a   : > { %v768_v51 = vpop.f32.mrf.mxu3 }
 0x15b   : > { %v754_v52 = vpop.f32.mrf.mxu1 }
 0x15c   : > { %v769_v55 = vadd.f32 %v768_v51, %v754_v52  ;;  %v1603_v51 = vld [vmem:[#allocation9 + $0x48] sm:$0xff]  ;;  %v1612_v52 = vld [vmem:[#allocation9 + $0x90] sm:$0xff] }
 0x15d   : > { %974 = vmatpush.bf16.msra.mxu3 %v1604_v49  ;;  %1177 = vmatpush.bf16.msrb.mxu0 %v1612_v52 }
 0x15e   : > { %v773_v57 = vadd.f32 %v769_v55, %v651_v54 }
 0x160   : > { %v779_v62 = vmul.f32 %v1696_v56, %v773_v57  ;;  %v1620_v57 = vld [vmem:[#allocation9 + $0xd0] sm:$0xff] }
 0x161   : > { %975 = vmatpush.bf16.msra.mxu3 %v1603_v51  ;;  %1191 = vmatpush.bf16.msrb.mxu1 %v1620_v57  ;;  %v1699_v57 = vld [vmem:[%s2177_s6] ss:$0 sm:$0xff] }
 0x162   : > { %v785_v63 = vadd.f32 %v1697_v58, %v779_v62  ;;  %v770_v0 = vpop.f32.mrf.mxu3 }
 0x163   : > { %v756_v3 = vpop.f32.mrf.mxu1 }
 0x164   : > { %v787_v4 = vmax.f32 %v785_v63, 0.0  ;;  %v771_v6 = vadd.f32 %v770_v0, %v756_v3  ;;  %v826_v3 = vld [vmem:[#allocation3] sm:$0xff] }
 0x166   : > { %v792_v7 = vpack.c.bf16 %v787_v4, %v787_v4  ;;  %v774_v8 = vadd.f32 %v771_v6, %v653_v5 }
 0x168   : > { %v780_v9 = vmul.f32 %v1696_v56, %v774_v8  ;;  %v795_v10 = vshrl.u32 %v792_v7, 16  ;;  %v798_v13 = vshll.u32 %v792_v7, 16  ;;  %v1611_v56 = vld [vmem:[#allocation9 + $0x88] sm:$0xff] }
 0x169   : > { %989 = vmatpush.bf16.msrb.mxu3 %v1611_v56 }
 0x16a   : > { %v786_v11 = vadd.f32 %v1697_v58, %v780_v9  ;;  %v797_v12 = vrot.slane %v795_v10, 7 }
 0x16c   : > { %v788_v14 = vmax.f32 %v786_v11, 0.0  ;;  %v800_v15 = vor.u32 %v798_v13, %v797_v12  ;;  %v801_v21 = vrot.slane %v797_v12, 4 }
 0x16e   : > { %v793_v16 = vpack.c.bf16 %v788_v14, %v788_v14  ;;  %811 = vrot.lane.b32.xlu1 %v800_v15, %s1869_s30 }
 0x170   : > { %v803_v17 = vshrl.u32 %v793_v16, 16  ;;  %v806_v20 = vshll.u32 %v793_v16, 16 }
 0x172   : > { %v805_v19 = vrot.slane %v803_v17, 7 }
 0x174   : > { %v808_v22 = vor.u32 %v806_v20, %v805_v19  ;;  %v810_v24 = vrot.slane %v805_v19, 4 }
 0x176   : > { %v809_v23 = vsel %vm2032_vm5, %v801_v21, %v808_v22 }
 0x177   : > { %813 = vrot.lane.b32.xlu2 %v809_v23, %s1869_s30 }
 0x17f   : > { %815 = vrot.lane.b32.xlu2 %v810_v24, %s1869_s30 }
 0x1d1   : > { %v814_v53 = vpop.permute.xlu2 %813 }
 0x1d2   : > { %v818_v54 = vrot.slane %v814_v53, 4 }
 0x1d4   : > { %v821_v55 = vsel %vm375_vm3, %v818_v54, %v814_v53 }
 0x1d5   : > { %829 = vst.msk [vmem:[#allocation3 + $0x8] sm:$0xff] %vm2080_vm8, %v821_v55  ;;  %v1698_v55 = vld [vmem:[%s2176_s5] ss:$0 sm:$0xff] }
 0x1d9   : > { %v816_v58 = vpop.permute.xlu2 %815 }
 0x1da   : > { %v819_v61 = vrot.slane %v816_v58, 4 }
 0x1dc   : > { %v822_v62 = vsel %vm375_vm3, %v819_v61, %v816_v58  ;;  %v834_v5 = vld [vmem:[#allocation3 + $0x8] sm:$0xff] }
 0x1dd   : > { %v831_v63 = vsel %vm401_vm7, %v822_v62, %v830_v60  ;;  %v878_v8 = vunpack.c.l.b16 %v834_v5  ;;  %v879_v40 = vunpack.c.h.b16 %v834_v5 }
 0x1de   : > { %832 = vst [vmem:[#allocation3 + $0x10] sm:$0x11] %v831_v63 }
 0x1e0   : > { %v812_v0 = vpop.permute.xlu1 %811 }
 0x1e1   : > { %v817_v4 = vrot.slane %v812_v0, 4 }
 0x1e3   : > { %v820_v59 = vsel %vm375_vm3, %v817_v4, %v812_v0 }
 0x1e4   : > { %v827_v6 = vsel %vm388_vm6, %v820_v59, %v826_v3 }
 0x1e5   : > { %828 = vst [vmem:[#allocation3] sm:$0xff] %v827_v6  ;;  %v876_v7 = vunpack.c.l.b16 %v827_v6  ;;  %v877_v43 = vunpack.c.h.b16 %v827_v6  ;;  %v853_v9 = vld [vmem:[#allocation3 + $0x10] sm:$0x11] }
 0x1e6   : > { %v880_v10 = vunpack.c.l.b16 %v853_v9  ;;  %v881_v22 = vunpack.c.h.b16 %v853_v9 }
 0x1e7   : > { %v882_v11 = vpack.c.b16 %v878_v8, %v876_v7  ;;  %v883_v12 = vpack.c.b16 %v879_v40, %v877_v43 }
 0x1e8   : > { %v884_v13 = vpack.c.b16 %v880_v10, %v880_v10  ;;  %v885_v28 = vpack.c.b16 %v881_v22, %v881_v22 }
 0x1e9   : > { %v889_v14 = vshll.u32 %v882_v11, 16  ;;  %1061 = vmatmul.bf16.vlgmr.msrb.gmra.mxu2 %v882_v11  ;;  %1523 = vmatmul.msk.bf16.vlgmr.msra.gmra.mxu1 %vm538_vm9, %v883_v12  ;;  %v887_v42 = vshrl.u32 %v882_v11, 16  ;;  %v901_v30 = vshll.u32 %v883_v12, 16  ;;  %v899_v35 = vshrl.u32 %v883_v12, 16 }
 0x1ea   : > { %v894_v15 = vshll.u32 %v884_v13, 16  ;;  %v1107_v27 = vrot.slane %v884_v13, 1  ;;  %v1110_v32 = vrot.slane %v885_v28, 1  ;;  %v906_v33 = vshll.u32 %v885_v28, 16 }
 0x1eb   : > { %v891_v16 = vrot.slane %v889_v14, 1  ;;  %v903_v18 = vrot.slane %v901_v30, 1 }
 0x1ec   : > { %v1081_v41 = vld [vmem:[#allocation3] sm:$0xee]  ;;  %v896_v17 = vrot.slane %v894_v15, 1  ;;  %v908_v37 = vrot.slane %v906_v33, 1 }
 0x1ed   : > { %v1102_v19 = vunpack.c.l.b16 %v1081_v41  ;;  %v1103_v20 = vunpack.c.h.b16 %v1081_v41  ;;  %v892_v21 = vor.u32 %v891_v16, %v887_v42  ;;  %v904_v36 = vor.u32 %v903_v18, %v899_v35 }
 0x1ef   : > { %v1104_v23 = vpack.c.b16 %v878_v8, %v1102_v19  ;;  %v897_v24 = vsel %vm458_vm10, %v892_v21, %v896_v17  ;;  %v1105_v25 = vpack.c.b16 %v879_v40, %v1103_v20  ;;  %v909_v38 = vsel %vm458_vm10, %v904_v36, %v908_v37 }
 0x1f0   : > { %976 = vmatmul.bf16.vlgmr.msra.gmra.mxu3 %v897_v24 }
 0x1f1   : > { %v1106_v26 = vrot.slane %v1104_v23, 1  ;;  %v1109_v31 = vrot.slane %v1105_v25, 1 }
 0x1f3   : > { %v1108_v29 = vsel %vm680_vm11, %v1106_v26, %v1107_v27  ;;  %v1111_v34 = vsel %vm680_vm11, %v1109_v31, %v1110_v32 }
 0x1f4   : > { %1178 = vmatmul.bf16.vlgmr.msrb.gmra.mxu0 %v1108_v29 }
 0x1f9   : > { %1560 = vmatmul.msk.bf16.vlgmr.msrb.gmra.mxu1 %vm538_vm9, %v1111_v34 }
 0x200   : > { %1486 = vmatmul.msk.bf16.vlgmr.msrb.gmra.mxu3 %vm538_vm9, %v909_v38 }
 0x266   : > { %v1076_v39 = vpop.f32.mrf.mxu1 }
 0x26c   : > { %v1062_v47 = vpop.f32.mrf.mxu2 }
 0x26e   : > { %v1078_v45 = vpop.f32.mrf.mxu1 }
 0x271   : > { %v1179_v51 = vpop.f32.mrf.mxu0 }
 0x273   : > { %v977_v44 = vpop.f32.mrf.mxu3 }
 0x274   : > { %v1064_v62 = vpop.f32.mrf.mxu2 }
 0x276   : > { %v1193_v48 = vpop.f32.mrf.mxu1 }
 0x277   : > { %v1194_v53 = vadd.f32 %v1193_v48, %v1179_v51 }
 0x279   : > { %v1181_v4 = vpop.f32.mrf.mxu0 }
 0x27b   : > { %v979_v46 = vpop.f32.mrf.mxu3 }
 0x27e   : > { %v1195_v63 = vpop.f32.mrf.mxu1 }
 0x27f   : > { %v1196_v5 = vadd.f32 %v1195_v63, %v1181_v4 }
 0x283   : > { %v991_v49 = vpop.f32.mrf.mxu3 }
 0x284   : > { %v992_v50 = vadd.f32 %v991_v49, %v977_v44 }
 0x286   : > { %v1063_v52 = vadd.f32 %v1062_v47, %v992_v50 }
 0x288   : > { %v1077_v54 = vadd.f32 %v1076_v39, %v1063_v52 }
 0x28a   : > { %v1198_v56 = vadd.f32 %v1194_v53, %v1077_v54 }
 0x28b   : > { %v993_v58 = vpop.f32.mrf.mxu3 }
 0x28c   : > { %v1204_v60 = vmul.f32 %v1698_v55, %v1198_v56  ;;  %v994_v61 = vadd.f32 %v993_v58, %v979_v46 }
 0x28e   : > { %v1210_v0 = vadd.f32 %v1699_v57, %v1204_v60  ;;  %v1065_v3 = vadd.f32 %v1064_v62, %v994_v61 }
 0x290   : > { %v1212_v59 = vadd.f32 %v1210_v0, %v2021_v1  ;;  %v1079_v6 = vadd.f32 %v1078_v45, %v1065_v3 }
 0x292   : > { %v1214_v7 = vmax.f32 %v1212_v59, 0.0  ;;  %v1199_v43 = vadd.f32 %v1196_v5, %v1079_v6 }
 0x294   : > { %v1205_v8 = vmul.f32 %v1698_v55, %v1199_v43  ;;  %1216 = vst [vmem:[%s331_s18] sm:$0xff] %v1214_v7 }
 0x296   : > { %v1211_v40 = vadd.f32 %v1699_v57, %v1205_v8 }
 0x298   : > { %v1213_v9 = vadd.f32 %v1211_v40, %v2023_v2 }
 0x29a   : > { %v1215_v1 = vmax.f32 %v1213_v9, 0.0 }
 0x29c   : > { %1217 = vst [vmem:[%s331_s18 + $0x8] sm:$0xff] %v1215_v1 }
 0x29d   : > { %1817 = shalt.err (!%p1814_p10)
}
 0x29e   : > { %s1870_s14 = smov 128  }
 0x29f   : > { %1632 = dma.vmem_to_hbm [thread:$0]  (%p1977_p3), %s1232_s19, 256, %s1234_s20, %s1219_s28, %s1870_s14, %s1870_s14, %s1869_s30  }
 0x2a0 PF: > { %s1248_s18 = sand.u32 1, %s1848_s24   ;;  %p2198_p12 = scmp.ge.s32.totalorder %s1860_s27, 2 }
 0x2a1   : > { %s1249_s1 = scalar_lea.sflag [#allocation6], %s1248_s18 }
 0x2a2   : > { %p1646_p13 = pnand %p2198_p12, %p1946_p6 }
 0x2a4   : > { %p1647_p0 = pneg %p1646_p13 }
 0x2a6   : > { %1843 = dma.done.wait (%p1647_p0), %s1249_s1, 256  }
 0x2a7   : > { %1845 = vsyncadd (%p1647_p0), %s1249_s1, 4294967040  ;;  %p21_p5 = scmp.ge.s32.totalorder %s1967_s22, 4   ;;  %s2199_s24 = smov %s1852_s25 }
 0x2a8   : > { %s2200_s25 = smov %s1856_s26  ;;  %s2201_s26 = smov %s1983_s10 }
 0x2a9   : > { %s2202_s27 = smov %s1967_s22  ;;  %23 = sbr.rel (!%p21_p5) target bundleno = 8 (0x8), region = 105 }
 0x2ae   :  { %1255 = vsyncpa [#allocation5], 1 }
 0x2af   :  { %1257 = vsyncpa [#allocation5 + $0x1], 1 }
 0x2b0   :  { %1258 = vsyncpa [#allocation8], 1 }
 0x2b1   :  { %1259 = vsyncpa [#allocation6], 1 }
 0x2b2   :  { %1261 = vsyncpa [#allocation6 + $0x1], 1 }

</bundles_post_ra>
